<compile_context>
chip_gen: v7x
topology: tpu7x:2x2x1
jax: 0.10.0
libtpu: 0.0.40
codegen_flags: <defaults>
</compile_context>

<pallas_src>
import jax
import jax.numpy as jnp
from jax.experimental import pallas as pl
from jax.experimental.pallas import tpu as pltpu

IN_DIM, HID_DIM, OUT_DIM = 11, 100, 3
HID_PAD, OUT_PAD = 128, 128
TM_CAP = 1024                 # rows per grid step (512-1024 ~ 85% of HBM roofline)
LANE_DENSE_OUT_MAX_B = 2048   # below this, keep the 128-wide lane-dense output


def mlp_kernel(x_ref, w1_ref, b1_ref, w2_ref, b2_ref, w3_ref, b3_ref, o_ref):
    x = x_ref[...]                                                  # (TM, 11)
    h1 = jnp.tanh(
        jnp.dot(x, w1_ref[...], preferred_element_type=jnp.float32) + b1_ref[...]
    )                                                               # (TM, 128)
    h2 = jnp.tanh(
        jnp.dot(h1, w2_ref[...], preferred_element_type=jnp.float32) + b2_ref[...]
    )                                                               # (TM, 128)
    out = jnp.dot(h2, w3_ref[...], preferred_element_type=jnp.float32) + b3_ref[...]
    # o_ref is (TM, 128) for small B (lane-dense) or (TM, 3) for large B.
    o_ref[...] = out[:, : o_ref.shape[-1]].astype(o_ref.dtype)


def _pad2(a, rows, cols):
    r, c = a.shape
    return jnp.pad(a, ((0, rows - r), (0, cols - c)))


def _round_up(n, m):
    return ((n + m - 1) // m) * m


def pad_params(params):
    """One-time lane-dense padding of weights/biases (exact: all pads are zero)."""
    w1, b1, w2, b2, w3, b3 = params
    return (
        _pad2(w1, IN_DIM, HID_PAD),    # (11, 128)  -- K left unpadded
        _pad2(b1, 1, HID_PAD),         # (1, 128)
        _pad2(w2, HID_PAD, HID_PAD),   # (128, 128)
        _pad2(b2, 1, HID_PAD),         # (1, 128)
        _pad2(w3, HID_PAD, OUT_PAD),   # (128, 128)
        _pad2(b3, 1, OUT_PAD),         # (1, 128)
    )


@jax.jit
def mlp_forward(x, padded_params):
    """x: (B, 11) float32; padded_params: output of pad_params()."""
    w1p, b1p, w2p, b2p, w3p, b3p = padded_params
    B = x.shape[0]

    # Big batch tiles (less per-step overhead), but aim for >=2 tiles when B is
    # large enough so both v7x TensorCores split the "parallel" axis.
    TM = min(TM_CAP, max(8, _round_up(pl.cdiv(B, 2), 8)))
    num_tiles = pl.cdiv(B, TM)  # partial trailing block OK: rows are independent

    lane_dense_out = B < LANE_DENSE_OUT_MAX_B
    out_w = OUT_PAD if lane_dense_out else OUT_DIM

    const = lambda i: (0, 0)
    out = pl.pallas_call(
        mlp_kernel,
        out_shape=jax.ShapeDtypeStruct((B, out_w), jnp.float32),
        grid=(num_tiles,),
        in_specs=[
            pl.BlockSpec((TM, IN_DIM), lambda i: (i, 0)),   # x: (B, 11), unpadded
            pl.BlockSpec((IN_DIM, HID_PAD), const),         # W1: VMEM-resident
            pl.BlockSpec((1, HID_PAD), const),              # b1
            pl.BlockSpec((HID_PAD, HID_PAD), const),        # W2
            pl.BlockSpec((1, HID_PAD), const),              # b2
            pl.BlockSpec((HID_PAD, OUT_PAD), const),        # W3
            pl.BlockSpec((1, OUT_PAD), const),              # b3
        ],
        out_specs=pl.BlockSpec((TM, out_w), lambda i: (i, 0)),
        compiler_params=pltpu.CompilerParams(
            dimension_semantics=("parallel",)),             # megacore on v7x
    )(x, w1p, b1p, w2p, b2p, w3p, b3p)

    return out[:, :OUT_DIM] if lane_dense_out else out


def init_params(key):
    # Deterministic init mimicking nn.Linear default (uniform +/- 1/sqrt(fan_in)).
    sizes = [(IN_DIM, HID_DIM), (HID_DIM, HID_DIM), (HID_DIM, OUT_DIM)]
    params = []
    for fan_in, fan_out in sizes:
        kw, kb, key = jax.random.split(key, 3)
        bound = 1.0 / jnp.sqrt(fan_in)
        w = jax.random.uniform(kw, (fan_in, fan_out), jnp.float32, -bound, bound)
        b = jax.random.uniform(kb, (1, fan_out), jnp.float32, -bound, bound)
        params += [w, b]
    return params


if __name__ == "__main__":
    key = jax.random.PRNGKey(0)
    kx, kp = jax.random.split(key)
    B = 8
    x = jax.random.normal(kx, (B, IN_DIM), jnp.float32)
    params = init_params(kp)

    # One-time parameter padding, hoisted out of the per-call path.
    padded = pad_params(params)

    out = mlp_forward(x, padded)
    jax.block_until_ready(out)

    # Reference check in plain JAX (same math, unpadded params).
    w1, b1, w2, b2, w3, b3 = params
    ref = jnp.tanh(x @ w1 + b1)
    ref = jnp.tanh(ref @ w2 + b2)
    ref = ref @ w3 + b3
    assert out.shape == (B, OUT_DIM)
    assert jnp.allclose(out, ref, atol=1e-5, rtol=1e-5)

    print("KERNEL_OK")
</pallas_src>

<mosaic_0001>
module attributes {stable_mosaic.version = 11 : i64} {
  func.func @mlp_kernel(%arg0: i32, %arg1: memref<8x11xf32, #tpu.memory_space<vmem>>, %arg2: memref<11x128xf32, #tpu.memory_space<vmem>>, %arg3: memref<1x128xf32, #tpu.memory_space<vmem>>, %arg4: memref<128x128xf32, #tpu.memory_space<vmem>>, %arg5: memref<1x128xf32, #tpu.memory_space<vmem>>, %arg6: memref<128x128xf32, #tpu.memory_space<vmem>>, %arg7: memref<1x128xf32, #tpu.memory_space<vmem>>, %arg8: memref<8x128xf32, #tpu.memory_space<vmem>>) attributes {dimension_semantics = [#tpu.dimension_semantics<parallel>], iteration_bounds = array<i64: 1>, scalar_prefetch = 0 : i64, scratch_operands = 0 : i64, tpu.core_type = #tpu.core_type<tc>, window_params = [{transform_indices = @transform_0, window_bounds = array<i64: 8, 11>}, {pipeline_mode = #tpu.pipeline_mode<synchronous>, transform_indices = @transform_1, window_bounds = array<i64: 11, 128>}, {pipeline_mode = #tpu.pipeline_mode<synchronous>, transform_indices = @transform_2, window_bounds = array<i64: 1, 128>}, {pipeline_mode = #tpu.pipeline_mode<synchronous>, transform_indices = @transform_3, window_bounds = array<i64: 128, 128>}, {pipeline_mode = #tpu.pipeline_mode<synchronous>, transform_indices = @transform_4, window_bounds = array<i64: 1, 128>}, {pipeline_mode = #tpu.pipeline_mode<synchronous>, transform_indices = @transform_5, window_bounds = array<i64: 128, 128>}, {pipeline_mode = #tpu.pipeline_mode<synchronous>, transform_indices = @transform_6, window_bounds = array<i64: 1, 128>}, {transform_indices = @transform_7, window_bounds = array<i64: 8, 128>}]} {
    %c0 = arith.constant 0 : index
    %c0_0 = arith.constant 0 : index
    %0 = vector.load %arg1[%c0, %c0_0] : memref<8x11xf32, #tpu.memory_space<vmem>>, vector<8x11xf32>
    %c0_1 = arith.constant 0 : index
    %c0_2 = arith.constant 0 : index
    %1 = vector.load %arg2[%c0_1, %c0_2] : memref<11x128xf32, #tpu.memory_space<vmem>>, vector<11x128xf32>
    %cst = arith.constant dense<0.000000e+00> : vector<8x128xf32>
    %2 = tpu.matmul %0, %1, %cst {dimension_numbers = #tpu.dot_dimension_numbers<[1], [0], [0], [1], [0, 0, 1, 1], [], []>} : vector<8x11xf32>, vector<11x128xf32>, vector<8x128xf32> -> vector<8x128xf32>
    %c0_3 = arith.constant 0 : index
    %c0_4 = arith.constant 0 : index
    %3 = vector.load %arg3[%c0_3, %c0_4] : memref<1x128xf32, #tpu.memory_space<vmem>>, vector<1x128xf32>
    %4 = vector.broadcast %3 : vector<1x128xf32> to vector<8x128xf32>
    %5 = arith.addf %2, %4 : vector<8x128xf32>
    %6 = math.tanh %5 : vector<8x128xf32>
    %c0_5 = arith.constant 0 : index
    %c0_6 = arith.constant 0 : index
    %7 = vector.load %arg4[%c0_5, %c0_6] : memref<128x128xf32, #tpu.memory_space<vmem>>, vector<128x128xf32>
    %cst_7 = arith.constant dense<0.000000e+00> : vector<8x128xf32>
    %8 = tpu.matmul %6, %7, %cst_7 {dimension_numbers = #tpu.dot_dimension_numbers<[1], [0], [0], [1], [0, 0, 1, 1], [], []>} : vector<8x128xf32>, vector<128x128xf32>, vector<8x128xf32> -> vector<8x128xf32>
    %c0_8 = arith.constant 0 : index
    %c0_9 = arith.constant 0 : index
    %9 = vector.load %arg5[%c0_8, %c0_9] : memref<1x128xf32, #tpu.memory_space<vmem>>, vector<1x128xf32>
    %10 = vector.broadcast %9 : vector<1x128xf32> to vector<8x128xf32>
    %11 = arith.addf %8, %10 : vector<8x128xf32>
    %12 = math.tanh %11 : vector<8x128xf32>
    %c0_10 = arith.constant 0 : index
    %c0_11 = arith.constant 0 : index
    %13 = vector.load %arg6[%c0_10, %c0_11] : memref<128x128xf32, #tpu.memory_space<vmem>>, vector<128x128xf32>
    %cst_12 = arith.constant dense<0.000000e+00> : vector<8x128xf32>
    %14 = tpu.matmul %12, %13, %cst_12 {dimension_numbers = #tpu.dot_dimension_numbers<[1], [0], [0], [1], [0, 0, 1, 1], [], []>} : vector<8x128xf32>, vector<128x128xf32>, vector<8x128xf32> -> vector<8x128xf32>
    %c0_13 = arith.constant 0 : index
    %c0_14 = arith.constant 0 : index
    %15 = vector.load %arg7[%c0_13, %c0_14] : memref<1x128xf32, #tpu.memory_space<vmem>>, vector<1x128xf32>
    %16 = vector.broadcast %15 : vector<1x128xf32> to vector<8x128xf32>
    %17 = arith.addf %14, %16 : vector<8x128xf32>
    %c0_15 = arith.constant 0 : index
    %c0_16 = arith.constant 0 : index
    %18 = vector.load %arg8[%c0_15, %c0_16] : memref<8x128xf32, #tpu.memory_space<vmem>>, vector<8x128xf32>
    tpu.vector_store %arg8[%c0_15, %c0_16], %17 {strides = array<i32>} : memref<8x128xf32, #tpu.memory_space<vmem>>, vector<8x128xf32>,
    return
  }
  func.func @transform_0(%arg0: i32) -> (i32, i32) {
    %c0_i32 = arith.constant 0 : i32
    %c0_i32_0 = arith.constant 0 : i32
    return %arg0, %c0_i32 : i32, i32
  }
  func.func @transform_1(%arg0: i32) -> (i32, i32) {
    %c0_i32 = arith.constant 0 : i32
    %c0_i32_0 = arith.constant 0 : i32
    %c0_i32_1 = arith.constant 0 : i32
    return %c0_i32, %c0_i32_0 : i32, i32
  }
  func.func @transform_2(%arg0: i32) -> (i32, i32) {
    %c0_i32 = arith.constant 0 : i32
    %c0_i32_0 = arith.constant 0 : i32
    %c0_i32_1 = arith.constant 0 : i32
    return %c0_i32, %c0_i32_0 : i32, i32
  }
  func.func @transform_3(%arg0: i32) -> (i32, i32) {
    %c0_i32 = arith.constant 0 : i32
    %c0_i32_0 = arith.constant 0 : i32
    %c0_i32_1 = arith.constant 0 : i32
    return %c0_i32, %c0_i32_0 : i32, i32
  }
  func.func @transform_4(%arg0: i32) -> (i32, i32) {
    %c0_i32 = arith.constant 0 : i32
    %c0_i32_0 = arith.constant 0 : i32
    %c0_i32_1 = arith.constant 0 : i32
    return %c0_i32, %c0_i32_0 : i32, i32
  }
  func.func @transform_5(%arg0: i32) -> (i32, i32) {
    %c0_i32 = arith.constant 0 : i32
    %c0_i32_0 = arith.constant 0 : i32
    %c0_i32_1 = arith.constant 0 : i32
    return %c0_i32, %c0_i32_0 : i32, i32
  }
  func.func @transform_6(%arg0: i32) -> (i32, i32) {
    %c0_i32 = arith.constant 0 : i32
    %c0_i32_0 = arith.constant 0 : i32
    %c0_i32_1 = arith.constant 0 : i32
    return %c0_i32, %c0_i32_0 : i32, i32
  }
  func.func @transform_7(%arg0: i32) -> (i32, i32) {
    %c0_i32 = arith.constant 0 : i32
    %c0_i32_0 = arith.constant 0 : i32
    return %arg0, %c0_i32 : i32, i32
  }
}

</mosaic_0001>

<bundles_post_ra>
// kernel: mlp_forward.1
= control target key start
LH: loop header
LB: loop body
LE: loop exit
PB: predicated region body
PF: predicated region fallthrough
CT: control target
= control target key end

     0   :  { %12 = vsyncpa [#allocation3], 0  ;;  %s781_s0 = inlined_call_operand.hbm [shape: f32[8,11], index: 0, kind: input, shape index: {}]   ;;  %s782_s1 = inlined_call_operand.hbm [shape: f32[11,128], index: 1, kind: input, shape index: {}]   ;;  %s783_s2 = inlined_call_operand.vmem [shape: f32[1,128], index: 2, kind: input, shape index: {}]   ;;  %s784_s3 = inlined_call_operand.hbm [shape: f32[128,128], index: 3, kind: input, shape index: {}]   ;;  %s785_s4 = inlined_call_operand.vmem [shape: f32[1,128], index: 4, kind: input, shape index: {}]   ;;  %s786_s5 = inlined_call_operand.hbm [shape: f32[128,128], index: 5, kind: input, shape index: {}]   ;;  %s787_s6 = inlined_call_operand.vmem [shape: f32[1,128], index: 6, kind: input, shape index: {}]   ;;  %s788_s7 = inlined_call_operand.vmem [shape: f32[8,128], index: 7, kind: output, shape index: {}]  }
   0x1   :  { %13 = vsyncpa [#allocation5], 0 }
   0x2   :  { %14 = vsyncpa [#allocation8], 0  ;;  %s642_s24 = smov [#allocation4]   ;;  %s548_s28 = scalar_lea.hbm %s782_s1, 256 }
   0x3   :  { %s30_s25 = sshll.u32 %s642_s24, 4  ;;  %p549_p0 = scmp.ne.s32.totalorder %s782_s1, %s548_s28  ;;  %s31_s25 = int_to_ptr.vmem [resolvable:$true] %s30_s25 }
   0x4   :  { %p552_p1 = scmp.lt.u32.totalorder %s548_s28, %s782_s1 }
   0x6   :  { %p554_p2 = pnand %p552_p1, %p549_p0 }
   0x8   :  { %557 = shalt.err (!%p554_p2)
}
   0x9   :  { %s558_s10 = scalar_lea.vmem %s31_s25, 256  ;;  %p563_p4 = scmp.lt.s32.totalorder %s31_s25, %s31_s25 }
   0xa   :  { %p559_p3 = scmp.ne.s32.totalorder %s31_s25, %s558_s10  ;;  %p564_p5 = scmp.lt.s32.totalorder %s558_s10, %s558_s10 }
   0xc   :  { %p565_p6 = por %p564_p5, %p563_p4 }
   0xe   :  { %p566_p7 = pnand %p565_p6, %p559_p3 }
  0x10   :  { %569 = shalt.err (!%p566_p7)
}
  0x11   :  { %s643_s11 = smov 128   ;;  %s644_s12 = smov 8  }
  0x12   :  { %36 = dma.hbm_to_vmem [thread:$0]  %s782_s1, 256, %s31_s25, [#allocation5], %s643_s11, %s643_s11, %s644_s12  }
  0x13   :  { %s645_s15 = smov [#allocation2]   ;;  %s646_s17 = smov [#allocation6]  }
  0x14   :  { %s21_s16 = sshll.u32 %s645_s15, 4  ;;  %s44_s18 = sshll.u32 %s646_s17, 4  ;;  %s22_s16 = int_to_ptr.vmem [resolvable:$true] %s21_s16  ;;  %s45_s18 = int_to_ptr.vmem [resolvable:$true] %s44_s18 }
  0x15   :  { %s570_s21 = scalar_lea.hbm %s781_s0, 128 }
  0x16   :  { %p571_p8 = scmp.ne.s32.totalorder %s781_s0, %s570_s21  ;;  %p574_p9 = scmp.lt.u32.totalorder %s570_s21, %s781_s0 }
  0x18   :  { %p576_p10 = pnand %p574_p9, %p571_p8 }
  0x1a   :  { %579 = shalt.err (!%p576_p10)
}
  0x1b   :  { %s580_s1 = scalar_lea.vmem %s22_s16, 128  ;;  %p585_p12 = scmp.lt.s32.totalorder %s22_s16, %s22_s16 }
  0x1c   :  { %p581_p11 = scmp.ne.s32.totalorder %s22_s16, %s580_s1  ;;  %p586_p13 = scmp.lt.s32.totalorder %s580_s1, %s580_s1 }
  0x1e   :  { %p587_p0 = por %p586_p13, %p585_p12 }
  0x20   :  { %p588_p1 = pnand %p587_p0, %p581_p11 }
  0x22   :  { %591 = shalt.err (!%p588_p1)
}
  0x23   :  { %24 = dma.hbm_to_vmem [thread:$0]  %s781_s0, 128, %s22_s16, [#allocation3]  }
  0x24   :  { %s592_s30 = scalar_lea.hbm %s784_s3, 2048 }
  0x25   :  { %p593_p2 = scmp.ne.s32.totalorder %s784_s3, %s592_s30  ;;  %p596_p3 = scmp.lt.u32.totalorder %s592_s30, %s784_s3 }
  0x27   :  { %p598_p4 = pnand %p596_p3, %p593_p2 }
  0x29   :  { %601 = shalt.err (!%p598_p4)
}
  0x2a   :  { %s602_s14 = scalar_lea.vmem %s45_s18, 2048  ;;  %p607_p6 = scmp.lt.s32.totalorder %s45_s18, %s45_s18 }
  0x2b   :  { %p603_p5 = scmp.ne.s32.totalorder %s45_s18, %s602_s14  ;;  %p608_p7 = scmp.lt.s32.totalorder %s602_s14, %s602_s14 }
  0x2d   :  { %p609_p8 = por %p608_p7, %p607_p6 }
  0x2f   :  { %p610_p9 = pnand %p609_p8, %p603_p5 }
  0x31   :  { %613 = shalt.err (!%p610_p9)
}
  0x32   :  { %50 = dma.hbm_to_vmem [thread:$0]  %s784_s3, 2048, %s45_s18, [#allocation5], %s643_s11, %s643_s11, %s644_s12  }
  0x33   :  { %s647_s16 = smov [#allocation7]   ;;  %s614_s21 = scalar_lea.hbm %s786_s5, 2048 }
  0x34   :  { %s58_s17 = sshll.u32 %s647_s16, 4  ;;  %p615_p10 = scmp.ne.s32.totalorder %s786_s5, %s614_s21  ;;  %s59_s17 = int_to_ptr.vmem [resolvable:$true] %s58_s17 }
  0x35   :  { %p618_p11 = scmp.lt.u32.totalorder %s614_s21, %s786_s5 }
  0x37   :  { %p620_p12 = pnand %p618_p11, %p615_p10 }
  0x39   :  { %623 = shalt.err (!%p620_p12)
}
  0x3a   :  { %s624_s1 = scalar_lea.vmem %s59_s17, 2048  ;;  %p629_p0 = scmp.lt.s32.totalorder %s59_s17, %s59_s17 }
  0x3b   :  { %p625_p13 = scmp.ne.s32.totalorder %s59_s17, %s624_s1  ;;  %p630_p1 = scmp.lt.s32.totalorder %s624_s1, %s624_s1 }
  0x3d   :  { %p631_p2 = por %p630_p1, %p629_p0 }
  0x3f   :  { %p632_p3 = pnand %p631_p2, %p625_p13 }
  0x41   :  { %635 = shalt.err (!%p632_p3)
}
  0x42   :  { %64 = dma.hbm_to_vmem [thread:$0]  %s786_s5, 2048, %s59_s17, [#allocation8], %s643_s11, %s643_s11, %s644_s12  }
  0x43   :  { %636 = dma.done.wait [#allocation3], 128  }
  0x44   :  { %637 = vsyncadd [#allocation3], 4294967168 }
  0x45   :  { %638 = dma.done.wait [#allocation5], 2304  }
  0x46   :  { %639 = vsyncadd [#allocation5], 4294964992 }
  0x47   :  { %640 = dma.done.wait [#allocation8], 2048  }
  0x48   :  { %641 = vsyncadd [#allocation8], 4294965248  ;;  %v648_v0 = vmov 0.0|0.0   ;;  %vm649_vm0 = vmmov 0   ;;  %v650_v1 = vmov 0.0   ;;  %vm93_vm1 = vcmask 1042432  }
  0x49   :  { %482 = vmatprep.subr.bf16.mxu0 %v648_v0  ;;  %486 = vmatprep.subr.bf16.mxu1 %v648_v0  ;;  %v80_v2 = vld [vmem:[#allocation4] sm:$0xff]  ;;  %v81_v3 = vld [vmem:[#allocation4 + $0x8] sm:$0x7]  ;;  %vm651_vm2 = vmmov 1   ;;  %v168_v5 = vld [vmem:[#allocation6] sm:$0xff]  ;;  %vm89_vm4 = vcmask 89088  }
  0x4a   :  { %409 = vmatprep.mubr.msk.f32.mxu0 %vm649_vm0, %v650_v1  ;;  %444 = vmatprep.mubr.msk.f32.mxu1 %vm649_vm0, %v650_v1  ;;  %vm484_vm3 = vmpackc.low %vm93_vm1, %vm651_vm2  ;;  %v483_v4 = vpack.c.bf16 %v81_v3, %v80_v2  ;;  %v169_v6 = vld [vmem:[#allocation6 + $0x8] sm:$0xff]  ;;  %v170_v7 = vld [vmem:[#allocation6 + $0x10] sm:$0xff] }
  0x4b   :  { %v487_v8 = vpack.c.bf16 %v169_v6, %v168_v5  ;;  %v171_v9 = vld [vmem:[#allocation6 + $0x18] sm:$0xff]  ;;  %v79_v10 = vld [vmem:[#allocation2] sm:$0xff]  ;;  %v172_v12 = vld [vmem:[#allocation6 + $0x20] sm:$0xff] }
  0x4c   :  { %485 = vmatpush3.bf16.msk.msra.mxu0 %vm484_vm3, %v483_v4  ;;  %v490_v11 = vpack.c.bf16 %v171_v9, %v170_v7  ;;  %v173_v13 = vld [vmem:[#allocation6 + $0x28] sm:$0xff]  ;;  %v174_v15 = vld [vmem:[#allocation6 + $0x30] sm:$0xff]  ;;  %v175_v16 = vld [vmem:[#allocation6 + $0x38] sm:$0xff] }
  0x4d   :  { %488 = vmatpush3.bf16.msra.mxu1 %v487_v8  ;;  %510 = vmatprep.subr.bf16.mxu0 %v648_v0  ;;  %v493_v14 = vpack.c.bf16 %v173_v13, %v172_v12  ;;  %v496_v17 = vpack.c.bf16 %v175_v16, %v174_v15  ;;  %v176_v18 = vld [vmem:[#allocation6 + $0x40] sm:$0xff]  ;;  %v177_v19 = vld [vmem:[#allocation6 + $0x48] sm:$0xff]  ;;  %v178_v21 = vld [vmem:[#allocation6 + $0x50] sm:$0xff] }
  0x4e   :  { %489 = vmatprep.subr.bf16.mxu1 %v648_v0  ;;  %v499_v20 = vpack.c.bf16 %v177_v19, %v176_v18  ;;  %v179_v22 = vld [vmem:[#allocation6 + $0x58] sm:$0xff]  ;;  %v180_v24 = vld [vmem:[#allocation6 + $0x60] sm:$0xff]  ;;  %v181_v25 = vld [vmem:[#allocation6 + $0x68] sm:$0xff] }
  0x4f   :  { %410 = vmatmul.mubr.msk.f32.vlgmr.msra.gmra.mrb[0].mxu0 %vm89_vm4, %v79_v10  ;;  %v502_v23 = vpack.c.bf16 %v179_v22, %v178_v21  ;;  %v505_v26 = vpack.c.bf16 %v181_v25, %v180_v24  ;;  %v182_v27 = vld [vmem:[#allocation6 + $0x70] sm:$0xff]  ;;  %v183_v28 = vld [vmem:[#allocation6 + $0x78] sm:$0xff]  ;;  %v262_v30 = vld [vmem:[#allocation7] sm:$0xff] }
  0x50   :  { %479 = vmatprep.mubr.msk.f32.mxu0 %vm649_vm0, %v650_v1  ;;  %v508_v29 = vpack.c.bf16 %v183_v28, %v182_v27  ;;  %v263_v31 = vld [vmem:[#allocation7 + $0x8] sm:$0xff]  ;;  %v264_v32 = vld [vmem:[#allocation7 + $0x10] sm:$0xff]  ;;  %v265_v34 = vld [vmem:[#allocation7 + $0x18] sm:$0xff] }
  0x51   :  { %491 = vmatpush3.bf16.msra.mxu1 %v490_v11  ;;  %v511_v33 = vpack.c.bf16 %v263_v31, %v262_v30  ;;  %v514_v35 = vpack.c.bf16 %v265_v34, %v264_v32  ;;  %v266_v36 = vld [vmem:[#allocation7 + $0x20] sm:$0xff]  ;;  %v267_v37 = vld [vmem:[#allocation7 + $0x28] sm:$0xff]  ;;  %v268_v39 = vld [vmem:[#allocation7 + $0x30] sm:$0xff] }
  0x52   :  { %492 = vmatprep.subr.bf16.mxu1 %v648_v0  ;;  %v517_v38 = vpack.c.bf16 %v267_v37, %v266_v36  ;;  %v269_v40 = vld [vmem:[#allocation7 + $0x38] sm:$0xff]  ;;  %v270_v42 = vld [vmem:[#allocation7 + $0x40] sm:$0xff]  ;;  %v271_v43 = vld [vmem:[#allocation7 + $0x48] sm:$0xff] }
  0x53   :  { %512 = vmatpush3.bf16.msra.mxu0 %v511_v33  ;;  %v520_v41 = vpack.c.bf16 %v269_v40, %v268_v39  ;;  %v523_v44 = vpack.c.bf16 %v271_v43, %v270_v42  ;;  %v363_v45 = vld [vmem:[%s783_s2] ss:$0 sm:$0xff]  ;;  %v272_v50 = vld [vmem:[#allocation7 + $0x50] sm:$0xff]  ;;  %v273_v51 = vld [vmem:[#allocation7 + $0x58] sm:$0xff] }
  0x54   :  { %513 = vmatprep.subr.bf16.mxu0 %v648_v0  ;;  %v526_v52 = vpack.c.bf16 %v273_v51, %v272_v50  ;;  %v274_v53 = vld [vmem:[#allocation7 + $0x60] sm:$0xff]  ;;  %v275_v54 = vld [vmem:[#allocation7 + $0x68] sm:$0xff]  ;;  %v276_v56 = vld [vmem:[#allocation7 + $0x70] sm:$0xff] }
  0x55   :  { %494 = vmatpush3.bf16.msra.mxu1 %v493_v14  ;;  %v529_v55 = vpack.c.bf16 %v275_v54, %v274_v53  ;;  %v277_v57 = vld [vmem:[#allocation7 + $0x78] sm:$0xff]  ;;  %v366_v59 = vld [vmem:[%s785_s4] ss:$0 sm:$0xff] }
  0x56   :  { %495 = vmatprep.subr.bf16.mxu1 %v648_v0  ;;  %v532_v58 = vpack.c.bf16 %v277_v57, %v276_v56  ;;  %v367_v1 = vld [vmem:[%s787_s6] ss:$0 sm:$0xff] }
  0x57   :  { %515 = vmatpush3.bf16.msra.mxu0 %v514_v35 }
  0x58   :  { %516 = vmatprep.subr.bf16.mxu0 %v648_v0 }
  0x59   :  { %497 = vmatpush3.bf16.msra.mxu1 %v496_v17 }
  0x5a   :  { %498 = vmatprep.subr.bf16.mxu1 %v648_v0 }
  0x5b   :  { %518 = vmatpush3.bf16.msra.mxu0 %v517_v38 }
  0x5c   :  { %519 = vmatprep.subr.bf16.mxu0 %v648_v0 }
  0x5d   :  { %500 = vmatpush3.bf16.msra.mxu1 %v499_v20 }
  0x5e   :  { %501 = vmatprep.subr.bf16.mxu1 %v648_v0 }
  0x5f   :  { %521 = vmatpush3.bf16.msra.mxu0 %v520_v41 }
  0x60   :  { %522 = vmatprep.subr.bf16.mxu0 %v648_v0 }
  0x61   :  { %503 = vmatpush3.bf16.msra.mxu1 %v502_v23 }
  0x62   :  { %504 = vmatprep.subr.bf16.mxu1 %v648_v0 }
  0x63   :  { %524 = vmatpush3.bf16.msra.mxu0 %v523_v44 }
  0x64   :  { %525 = vmatprep.subr.bf16.mxu0 %v648_v0 }
  0x65   :  { %506 = vmatpush3.bf16.msra.mxu1 %v505_v26 }
  0x66   :  { %507 = vmatprep.subr.bf16.mxu1 %v648_v0 }
  0x67   :  { %527 = vmatpush3.bf16.msra.mxu0 %v526_v52 }
  0x68   :  { %528 = vmatprep.subr.bf16.mxu0 %v648_v0 }
  0x69   :  { %509 = vmatpush3.bf16.msra.mxu1 %v508_v29 }
  0x6b   :  { %530 = vmatpush3.bf16.msra.mxu0 %v529_v55 }
  0x6c   :  { %531 = vmatprep.subr.bf16.mxu0 %v648_v0 }
  0x6f   :  { %533 = vmatpush3.bf16.msra.mxu0 %v532_v58 }
 0x122   :  { %v163_v46 = vpop.f32.mrb[0].mxu0 }
 0x123   :  { %v164_v47 = vadd.f32 %v363_v45, %v163_v46  ;;  %v411_v48 = vpop.f32.mrb[1].mxu0 }
 0x125   :  { %544 = vtanh.f32 %v164_v47 }
 0x12f   :  { %v545_v49 = vpop.eup %544 }
 0x130   :  { %445 = vmatmul.mubr.f32.vlgmr.msra.gmra.mrb[0].mxu1 %v545_v49 }
 0x203   :  { %v257_v60 = vpop.f32.mrb[0].mxu1 }
 0x204   :  { %v258_v61 = vadd.f32 %v366_v59, %v257_v60  ;;  %v446_v62 = vpop.f32.mrb[1].mxu1 }
 0x206   :  { %546 = vtanh.f32 %v258_v61 }
 0x210   :  { %v547_v63 = vpop.eup %546 }
 0x211   :  { %480 = vmatmul.mubr.f32.vlgmr.msra.gmra.mrb[2].mxu0 %v547_v63 }
 0x2e4   :  { %v351_v2 = vpop.f32.mrb[2].mxu0 }
 0x2e5   :  { %v352_v3 = vadd.f32 %v367_v1, %v351_v2  ;;  %v481_v4 = vpop.f32.mrb[3].mxu0 }
 0x2e7   :  { %355 = vst [vmem:[%s788_s7] sm:$0xff] %v352_v3 }
 0x2e8   :  { %360 = vsyncpa [#allocation3], 1 }
 0x2e9   :  { %361 = vsyncpa [#allocation5], 1 }
 0x2ea   :  { %362 = vsyncpa [#allocation8], 1 }

</bundles_post_ra>
